<compile_context>
chip_gen: v5e
topology: v5e:2x2
jax: 0.10.0
libtpu: 0.0.40
codegen_flags: <defaults>
</compile_context>

<pallas_src>
import functools

import jax
import jax.numpy as jnp
from jax.experimental import pallas as pl
from jax.experimental.pallas import tpu as pltpu


# --------------------------------------------------------------------------- #
# Kernel 1: fused (upsample x2 + 3x3 conv) + BatchNorm partial statistics.
# --------------------------------------------------------------------------- #
def _conv_stats_kernel(xb_ref, w_ref, out_ref, stats_ref, *, th, W, Cin):
    """One (batch, row-band) tile.

    xb_ref   : (1, th+2, W+2, Cin) bf16  halo'd row band, original resolution
    w_ref    : (9*Cin, C4p)        bf16  K-packed folded subpixel weights
    out_ref  : (1, th*W, C4p)      bf16  conv output, subpixel-packed lanes
    stats_ref: (1, 2, C4p)         f32   per-tile BN partials [sum, sum-of-sq]
    """
    # In-VMEM "im2col", K-packed: 3 row shifts concatenated on channels, then
    # 3 column shifts concatenated on channels -> K index = b*3*Cin + a*Cin + ci.
    rows = [xb_ref[0, a:a + th] for a in range(3)]          # 3 x (th, W+2, Cin)
    band = jnp.concatenate(rows, axis=-1)                   # (th, W+2, 3*Cin)
    slab = jnp.concatenate([band[:, b:b + W, :] for b in range(3)],
                           axis=-1)                         # (th, W, 9*Cin)
    slab = slab.reshape(th * W, 9 * Cin)

    # Single MXU matmul, bf16 operands, f32 accumulation.
    acc = jnp.dot(slab, w_ref[...], preferred_element_type=jnp.float32)

    out_ref[0] = acc.astype(out_ref.dtype)                  # bf16 intermediate
    # BN partials from the f32 accumulator (never from the bf16 mid tensor).
    s1 = jnp.sum(acc, axis=0, keepdims=True)                # (1, C4p)
    s2 = jnp.sum(acc * acc, axis=0, keepdims=True)          # (1, C4p)
    stats_ref[0] = jnp.concatenate([s1, s2], axis=0)        # (2, C4p)


# --------------------------------------------------------------------------- #
# Kernel 2: fused affine BatchNorm (precomputed scale/shift) + ReLU.
# --------------------------------------------------------------------------- #
def _bn_relu_kernel(x_ref, scale_ref, shift_ref, o_ref):
    x = x_ref[...].astype(jnp.float32)
    o_ref[...] = jnp.maximum(x * scale_ref[...] + shift_ref[...], 0.0)


# --------------------------------------------------------------------------- #
# Tiling helpers (byte-budget based).
# --------------------------------------------------------------------------- #
def _round_up(x, m):
    return (x + m - 1) // m * m


def _pick_row_tile(H, W, Cin, C4p, budget_bytes, prefer_even_tiles):
    """Largest th dividing H whose per-grid-step VMEM estimate fits the budget."""
    def est(th):
        return (2 * (th + 2) * (W + 2) * Cin * 2      # bf16 input band, dbl-buffered
                + 2 * 9 * Cin * C4p * 2               # bf16 K-packed weights
                + 2 * th * W * C4p * 2                # bf16 output tile, dbl-buffered
                + th * W * C4p * 4                    # f32 MXU accumulator value
                + 2 * th * W * 9 * Cin * 2            # bf16 im2col slab + concat temp
                + 4 * 2 * C4p * 4)                    # stats tiles
    cands = [th for th in range(H, 0, -1)
             if H % th == 0 and ((th * W) % 8 == 0 or th == H)]
    fits = [th for th in cands if est(th) <= budget_bytes] or [cands[-1]]
    if prefer_even_tiles:
        # v7x has 2 TensorCores; prefer an even number of grid steps when B == 1.
        even = [th for th in fits if (H // th) % 2 == 0]
        if even:
            return even[0]
    return fits[0]


def _pick_flat_tile(rows, C4p, budget_bytes, min_steps=2):
    """Largest row tile for kernel 2 sized by bytes (bf16 in + f32 out, dbl-buf)."""
    cap = max(8, budget_bytes // (12 * C4p))
    best = None
    for tr in range(min(rows, cap), 0, -1):
        if rows % tr == 0 and (tr % 8 == 0 or tr == rows):
            if best is None:
                best = tr
            if rows // tr >= min_steps:
                return tr
    return best or rows


# --------------------------------------------------------------------------- #
# Wrapper: NCHW in / NCHW out (PyTorch convention).
# --------------------------------------------------------------------------- #
def up_conv_forward(x_nchw, w_hwio, bias, gamma, beta, eps=1e-5,
                    tile_vmem_budget_bytes=36 * 1024 * 1024,
                    vmem_limit_bytes=48 * 1024 * 1024):
    """Upsample(x2, nearest) -> Conv2d(3x3, pad=1) -> BatchNorm2d(train) -> ReLU.

    Generation notes: the default budgets fit v7x's 64 MiB VMEM; on v5e/v6e
    (128 MiB physical) both can be raised (e.g. 80-100 MB) for larger tiles.
    """
    B, Cin, H, W = x_nchw.shape
    KH, KW, _, Cout = w_hwio.shape
    assert (KH, KW) == (3, 3)
    # The conv bias is a per-channel constant; it cancels exactly under
    # train-mode BatchNorm (batch-mean subtraction) -> dropped from compute.
    del bias

    # --- tiny XLA-side prep (original resolution / parameter sized only) -----
    Coutp = _round_up(max(Cout, 1), 32)      # 4*Coutp % 128 == 0 -> unmasked stores
    C4p = 4 * Coutp

    # Fold the 3x3 kernel of the conv-on-upsampled-image into 9 per-shift
    # (Cin, 4*Coutp) matrices, K-packed as (9*Cin, 4*Coutp).
    # S[d, a, k]: does kernel row k contribute to output subpixel d through
    # padded-original-input row offset a (a in {0,1,2})?
    S = jnp.array([[[1., 0., 0.], [0., 1., 1.], [0., 0., 0.]],
                   [[0., 0., 0.], [1., 1., 0.], [0., 0., 1.]]], jnp.float32)
    w_pad = jnp.pad(w_hwio, ((0, 0), (0, 0), (0, 0), (0, Coutp - Cout)))
    # w_fold[b, a, i, p, q, o] = sum_{k,l} S[p,a,k] S[q,b,l] w[k,l,i,o]
    # Row order (b, a, i) matches the slab concat order in the kernel.
    w_fold = jnp.einsum('pak,qbl,klio->baipqo', S, S, w_pad)
    w_k = w_fold.reshape(9 * Cin, C4p).astype(jnp.bfloat16)

    th = _pick_row_tile(H, W, Cin, C4p, tile_vmem_budget_bytes,
                        prefer_even_tiles=(B == 1))
    n_t = H // th
    n_g = B * n_t

    # bf16 padded input, pre-gathered into halo'd row bands so each grid step
    # DMAs only its own (th+2, W+2, Cin) band (no full-image VMEM residency).
    x_nhwc = jnp.transpose(x_nchw, (0, 2, 3, 1)).astype(jnp.bfloat16)
    xp = jnp.pad(x_nhwc, ((0, 0), (1, 1), (1, 1), (0, 0)))   # (B, H+2, W+2, Cin)
    row_idx = jnp.arange(n_t)[:, None] * th + jnp.arange(th + 2)[None, :]
    xb = jnp.take(xp, row_idx, axis=1)                       # (B, n_t, th+2, W+2, Cin)
    xb = xb.reshape(n_g, th + 2, W + 2, Cin)

    kernel = functools.partial(_conv_stats_kernel, th=th, W=W, Cin=Cin)
    conv_mid, stats = pl.pallas_call(
        kernel,
        out_shape=(
            jax.ShapeDtypeStruct((n_g, th * W, C4p), jnp.bfloat16),
            jax.ShapeDtypeStruct((n_g, 2, C4p), jnp.float32),
        ),
        grid=(n_g,),
        in_specs=[
            pl.BlockSpec((1, th + 2, W + 2, Cin), lambda g: (g, 0, 0, 0)),
            pl.BlockSpec((9 * Cin, C4p), lambda g: (0, 0)),
        ],
        out_specs=(
            pl.BlockSpec((1, th * W, C4p), lambda g: (g, 0, 0)),
            pl.BlockSpec((1, 2, C4p), lambda g: (g, 0, 0)),
        ),
        compiler_params=pltpu.CompilerParams(
            dimension_semantics=("parallel",),
            vmem_limit_bytes=vmem_limit_bytes),
    )(xb, w_k)

    # --- BatchNorm2d (training mode) batch statistics: tiny XLA reduction ----
    n = B * H * W * 4                                   # == B * (2H) * (2W)
    tot = stats.sum(axis=0)                             # (2, C4p) f32
    csum = tot[0].reshape(4, Coutp).sum(axis=0)
    cssq = tot[1].reshape(4, Coutp).sum(axis=0)
    mean = csum / n
    # NOTE: E[x^2]-E[x]^2 in f32; stats come from the f32 accumulator, never bf16.
    # TODO(synk): shifted two-pass / Welford for extreme activation scales.
    var = jnp.maximum(cssq / n - mean * mean, 0.0)
    gamma_p = jnp.pad(gamma, (0, Coutp - Cout))
    beta_p = jnp.pad(beta, (0, Coutp - Cout))
    scale = gamma_p * jax.lax.rsqrt(var + eps)          # padded channels -> 0
    shift = beta_p - mean * scale
    scale4 = jnp.tile(scale, 4).reshape(1, C4p)         # matches (di,dj,co) packing
    shift4 = jnp.tile(shift, 4).reshape(1, C4p)

    # --- kernel 2: normalize + ReLU on large lane-dense flat tiles -----------
    rows = B * H * W
    tr = _pick_flat_tile(rows, C4p, tile_vmem_budget_bytes)
    y_flat = pl.pallas_call(
        _bn_relu_kernel,
        out_shape=jax.ShapeDtypeStruct((rows, C4p), jnp.float32),
        grid=(rows // tr,),
        in_specs=[
            pl.BlockSpec((tr, C4p), lambda i: (i, 0)),
            pl.BlockSpec((1, C4p), lambda i: (0, 0)),
            pl.BlockSpec((1, C4p), lambda i: (0, 0)),
        ],
        out_specs=pl.BlockSpec((tr, C4p), lambda i: (i, 0)),
        compiler_params=pltpu.CompilerParams(
            dimension_semantics=("parallel",),
            vmem_limit_bytes=vmem_limit_bytes),
    )(conv_mid.reshape(rows, C4p), scale4, shift4)

    # subpixel-planar -> NCHW (single XLA relayout pass; padded channels sliced).
    # TODO(synk): fold this relayout into kernel 2 (NCHW out_specs + in-kernel
    # unpack) once Mosaic's general N-D transpose lowering is dependable; kept
    # in XLA here so the kernels are guaranteed to lower on all generations.
    y = y_flat.reshape(B, H, W, 2, 2, Coutp)[..., :Cout]
    y = jnp.transpose(y, (0, 5, 1, 3, 2, 4)).reshape(B, Cout, 2 * H, 2 * W)
    return y


# --------------------------------------------------------------------------- #
# Pure-JAX reference for correctness checking.
# --------------------------------------------------------------------------- #
def up_conv_reference(x_nchw, w_hwio, bias, gamma, beta, eps=1e-5):
    x_up = jnp.repeat(jnp.repeat(x_nchw, 2, axis=2), 2, axis=3)
    w_oihw = jnp.transpose(w_hwio, (3, 2, 0, 1))
    conv = jax.lax.conv_general_dilated(
        x_up, w_oihw, window_strides=(1, 1), padding="SAME",
        dimension_numbers=("NCHW", "OIHW", "NCHW"),
        precision=jax.lax.Precision.HIGHEST)
    conv = conv + bias.reshape(1, -1, 1, 1)
    mean = jnp.mean(conv, axis=(0, 2, 3), keepdims=True)
    var = jnp.mean((conv - mean) ** 2, axis=(0, 2, 3), keepdims=True)
    y = ((conv - mean) / jnp.sqrt(var + eps) * gamma.reshape(1, -1, 1, 1)
         + beta.reshape(1, -1, 1, 1))
    return jnp.maximum(y, 0.0)


if __name__ == "__main__":
    key = jax.random.PRNGKey(0)
    B, C_in, C_out, H, W = 2, 4, 8, 16, 16              # output spatial -> 32x32

    kx, kw = jax.random.split(key)
    x = jax.random.normal(kx, (B, C_in, H, W), dtype=jnp.float32)

    # Deterministic parameter init mirroring _init_vit_weights:
    #  Conv2d: kaiming_normal_(mode='fan_out') -> std = sqrt(2/(C_out*3*3)), bias = 0
    #  BatchNorm2d: weight = 1, bias = 0
    fan_out = C_out * 3 * 3
    w_hwio = (jax.random.normal(kw, (3, 3, C_in, C_out), jnp.float32)
              * jnp.sqrt(2.0 / fan_out))
    bias = jnp.zeros((C_out,), jnp.float32)
    gamma = jnp.ones((C_out,), jnp.float32)
    beta = jnp.zeros((C_out,), jnp.float32)

    # Small VMEM tile budget so the toy shape exercises the multi-row-tile path
    # (production default is 36 MiB).
    fwd = jax.jit(functools.partial(up_conv_forward,
                                    tile_vmem_budget_bytes=200 * 1024))
    out = jax.block_until_ready(fwd(x, w_hwio, bias, gamma, beta))

    ref = up_conv_reference(x, w_hwio, bias, gamma, beta)
    assert out.shape == (B, C_out, 2 * H, 2 * W), out.shape
    err = jnp.abs(out - ref)
    # bf16 MXU operands + bf16 intermediate vs. an f32/HIGHEST reference.
    assert float(err.max()) < 1e-1, float(err.max())
    assert float(err.mean()) < 1.5e-2, float(err.mean())

    print("KERNEL_OK")
</pallas_src>

<mosaic_0001>
module attributes {stable_mosaic.version = 11 : i64} {
  func.func @_conv_stats_kernel(%arg0: i32, %arg1: memref<1x10x18x4xbf16, #tpu.memory_space<vmem>>, %arg2: memref<36x128xbf16, #tpu.memory_space<vmem>>, %arg3: memref<1x128x128xbf16, #tpu.memory_space<vmem>>, %arg4: memref<1x2x128xf32, #tpu.memory_space<vmem>>) attributes {dimension_semantics = [#tpu.dimension_semantics<parallel>], iteration_bounds = array<i64: 4>, scalar_prefetch = 0 : i64, scratch_operands = 0 : i64, tpu.core_type = #tpu.core_type<tc>, window_params = [{transform_indices = @transform_0, window_bounds = array<i64: 1, 10, 18, 4>}, {pipeline_mode = #tpu.pipeline_mode<synchronous>, transform_indices = @transform_1, window_bounds = array<i64: 36, 128>}, {transform_indices = @transform_2, window_bounds = array<i64: 1, 128, 128>}, {transform_indices = @transform_3, window_bounds = array<i64: 1, 2, 128>}]} {
    %c0 = arith.constant 0 : index
    %c0_0 = arith.constant 0 : index
    %c0_1 = arith.constant 0 : index
    %c0_2 = arith.constant 0 : index
    %0 = vector.load %arg1[%c0, %c0_0, %c0_1, %c0_2] : memref<1x10x18x4xbf16, #tpu.memory_space<vmem>>, vector<1x8x18x4xbf16>
    %1 = vector.shape_cast %0 : vector<1x8x18x4xbf16> to vector<8x18x4xbf16>
    %c0_3 = arith.constant 0 : index
    %c1 = arith.constant 1 : index
    %c0_4 = arith.constant 0 : index
    %c0_5 = arith.constant 0 : index
    %2 = vector.load %arg1[%c0_3, %c1, %c0_4, %c0_5] : memref<1x10x18x4xbf16, #tpu.memory_space<vmem>>, vector<1x8x18x4xbf16>
    %3 = vector.shape_cast %2 : vector<1x8x18x4xbf16> to vector<8x18x4xbf16>
    %c0_6 = arith.constant 0 : index
    %c2 = arith.constant 2 : index
    %c0_7 = arith.constant 0 : index
    %c0_8 = arith.constant 0 : index
    %4 = vector.load %arg1[%c0_6, %c2, %c0_7, %c0_8] : memref<1x10x18x4xbf16, #tpu.memory_space<vmem>>, vector<1x8x18x4xbf16>
    %5 = vector.shape_cast %4 : vector<1x8x18x4xbf16> to vector<8x18x4xbf16>
    %6 = tpu.concatenate %1, %3, %5 in 2 : vector<8x18x4xbf16>, vector<8x18x4xbf16>, vector<8x18x4xbf16> -> vector<8x18x12xbf16>
    %7 = vector.extract_strided_slice %6 {offsets = [0, 0, 0], sizes = [8, 16, 12], strides = [1, 1, 1]} : vector<8x18x12xbf16> to vector<8x16x12xbf16>
    %8 = vector.extract_strided_slice %6 {offsets = [0, 1, 0], sizes = [8, 16, 12], strides = [1, 1, 1]} : vector<8x18x12xbf16> to vector<8x16x12xbf16>
    %9 = vector.extract_strided_slice %6 {offsets = [0, 2, 0], sizes = [8, 16, 12], strides = [1, 1, 1]} : vector<8x18x12xbf16> to vector<8x16x12xbf16>
    %10 = tpu.concatenate %7, %8, %9 in 2 : vector<8x16x12xbf16>, vector<8x16x12xbf16>, vector<8x16x12xbf16> -> vector<8x16x36xbf16>
    %11 = vector.shape_cast %10 : vector<8x16x36xbf16> to vector<128x36xbf16>
    %c0_9 = arith.constant 0 : index
    %c0_10 = arith.constant 0 : index
    %12 = vector.load %arg2[%c0_9, %c0_10] : memref<36x128xbf16, #tpu.memory_space<vmem>>, vector<36x128xbf16>
    %cst = arith.constant dense<0.000000e+00> : vector<128x128xf32>
    %13 = tpu.matmul %11, %12, %cst {dimension_numbers = #tpu.dot_dimension_numbers<[1], [0], [0], [1], [0, 0, 1, 1], [], []>} : vector<128x36xbf16>, vector<36x128xbf16>, vector<128x128xf32> -> vector<128x128xf32>
    %14 = arith.truncf %13 : vector<128x128xf32> to vector<128x128xbf16>
    %c0_11 = arith.constant 0 : index
    %c0_12 = arith.constant 0 : index
    %c0_13 = arith.constant 0 : index
    %15 = vector.load %arg3[%c0_11, %c0_12, %c0_13] : memref<1x128x128xbf16, #tpu.memory_space<vmem>>, vector<1x128x128xbf16>
    %16 = vector.shape_cast %15 : vector<1x128x128xbf16> to vector<128x128xbf16>
    %17 = vector.shape_cast %14 : vector<128x128xbf16> to vector<1x128x128xbf16>
    tpu.vector_store %arg3[%c0_11, %c0_12, %c0_13], %17 {strides = array<i32>} : memref<1x128x128xbf16, #tpu.memory_space<vmem>>, vector<1x128x128xbf16>,
    %cst_14 = arith.constant dense<0.000000e+00> : vector<128xf32>
    %18 = vector.multi_reduction <add>, %13, %cst_14 [0] : vector<128x128xf32> to vector<128xf32>
    %19 = vector.shape_cast %18 : vector<128xf32> to vector<1x128xf32>
    %20 = arith.mulf %13, %13 : vector<128x128xf32>
    %cst_15 = arith.constant dense<0.000000e+00> : vector<128xf32>
    %21 = vector.multi_reduction <add>, %20, %cst_15 [0] : vector<128x128xf32> to vector<128xf32>
    %22 = vector.shape_cast %21 : vector<128xf32> to vector<1x128xf32>
    %23 = tpu.concatenate %19, %22 in 0 : vector<1x128xf32>, vector<1x128xf32> -> vector<2x128xf32>
    %c0_16 = arith.constant 0 : index
    %c0_17 = arith.constant 0 : index
    %c0_18 = arith.constant 0 : index
    %24 = vector.load %arg4[%c0_16, %c0_17, %c0_18] : memref<1x2x128xf32, #tpu.memory_space<vmem>>, vector<1x2x128xf32>
    %25 = vector.shape_cast %24 : vector<1x2x128xf32> to vector<2x128xf32>
    %26 = vector.shape_cast %23 : vector<2x128xf32> to vector<1x2x128xf32>
    tpu.vector_store %arg4[%c0_16, %c0_17, %c0_18], %26 {strides = array<i32>} : memref<1x2x128xf32, #tpu.memory_space<vmem>>, vector<1x2x128xf32>,
    return
  }
  func.func @transform_0(%arg0: i32) -> (i32, i32, i32, i32) {
    %c0_i32 = arith.constant 0 : i32
    %c0_i32_0 = arith.constant 0 : i32
    %c0_i32_1 = arith.constant 0 : i32
    %c0_i32_2 = arith.constant 0 : i32
    return %arg0, %c0_i32, %c0_i32_0, %c0_i32_1 : i32, i32, i32, i32
  }
  func.func @transform_1(%arg0: i32) -> (i32, i32) {
    %c0_i32 = arith.constant 0 : i32
    %c0_i32_0 = arith.constant 0 : i32
    %c0_i32_1 = arith.constant 0 : i32
    return %c0_i32, %c0_i32_0 : i32, i32
  }
  func.func @transform_2(%arg0: i32) -> (i32, i32, i32) {
    %c0_i32 = arith.constant 0 : i32
    %c0_i32_0 = arith.constant 0 : i32
    %c0_i32_1 = arith.constant 0 : i32
    return %arg0, %c0_i32, %c0_i32_0 : i32, i32, i32
  }
  func.func @transform_3(%arg0: i32) -> (i32, i32, i32) {
    %c0_i32 = arith.constant 0 : i32
    %c0_i32_0 = arith.constant 0 : i32
    %c0_i32_1 = arith.constant 0 : i32
    return %arg0, %c0_i32, %c0_i32_0 : i32, i32, i32
  }
}

module attributes {stable_mosaic.version = 11 : i64} {
  func.func @_bn_relu_kernel(%arg0: i32, %arg1: memref<128x128xbf16, #tpu.memory_space<vmem>>, %arg2: memref<1x128xf32, #tpu.memory_space<vmem>>, %arg3: memref<1x128xf32, #tpu.memory_space<vmem>>, %arg4: memref<128x128xf32, #tpu.memory_space<vmem>>) attributes {dimension_semantics = [#tpu.dimension_semantics<parallel>], iteration_bounds = array<i64: 4>, scalar_prefetch = 0 : i64, scratch_operands = 0 : i64, tpu.core_type = #tpu.core_type<tc>, window_params = [{transform_indices = @transform_0, window_bounds = array<i64: 128, 128>}, {pipeline_mode = #tpu.pipeline_mode<synchronous>, transform_indices = @transform_1, window_bounds = array<i64: 1, 128>}, {pipeline_mode = #tpu.pipeline_mode<synchronous>, transform_indices = @transform_2, window_bounds = array<i64: 1, 128>}, {transform_indices = @transform_3, window_bounds = array<i64: 128, 128>}]} {
    %c0 = arith.constant 0 : index
    %c0_0 = arith.constant 0 : index
    %0 = vector.load %arg1[%c0, %c0_0] : memref<128x128xbf16, #tpu.memory_space<vmem>>, vector<128x128xbf16>
    %1 = arith.extf %0 : vector<128x128xbf16> to vector<128x128xf32>
    %c0_1 = arith.constant 0 : index
    %c0_2 = arith.constant 0 : index
    %2 = vector.load %arg2[%c0_1, %c0_2] : memref<1x128xf32, #tpu.memory_space<vmem>>, vector<1x128xf32>
    %3 = vector.broadcast %2 : vector<1x128xf32> to vector<128x128xf32>
    %4 = arith.mulf %1, %3 : vector<128x128xf32>
    %c0_3 = arith.constant 0 : index
    %c0_4 = arith.constant 0 : index
    %5 = vector.load %arg3[%c0_3, %c0_4] : memref<1x128xf32, #tpu.memory_space<vmem>>, vector<1x128xf32>
    %6 = vector.broadcast %5 : vector<1x128xf32> to vector<128x128xf32>
    %7 = arith.addf %4, %6 : vector<128x128xf32>
    %cst = arith.constant 0.000000e+00 : f32
    %8 = vector.broadcast %cst : f32 to vector<128x128xf32>
    %9 = arith.maximumf %7, %8 : vector<128x128xf32>
    %c0_5 = arith.constant 0 : index
    %c0_6 = arith.constant 0 : index
    %10 = vector.load %arg4[%c0_5, %c0_6] : memref<128x128xf32, #tpu.memory_space<vmem>>, vector<128x128xf32>
    tpu.vector_store %arg4[%c0_5, %c0_6], %9 {strides = array<i32>} : memref<128x128xf32, #tpu.memory_space<vmem>>, vector<128x128xf32>,
    return
  }
  func.func @transform_0(%arg0: i32) -> (i32, i32) {
    %c0_i32 = arith.constant 0 : i32
    %c0_i32_0 = arith.constant 0 : i32
    return %arg0, %c0_i32 : i32, i32
  }
  func.func @transform_1(%arg0: i32) -> (i32, i32) {
    %c0_i32 = arith.constant 0 : i32
    %c0_i32_0 = arith.constant 0 : i32
    %c0_i32_1 = arith.constant 0 : i32
    return %c0_i32, %c0_i32_0 : i32, i32
  }
  func.func @transform_2(%arg0: i32) -> (i32, i32) {
    %c0_i32 = arith.constant 0 : i32
    %c0_i32_0 = arith.constant 0 : i32
    %c0_i32_1 = arith.constant 0 : i32
    return %c0_i32, %c0_i32_0 : i32, i32
  }
  func.func @transform_3(%arg0: i32) -> (i32, i32) {
    %c0_i32 = arith.constant 0 : i32
    %c0_i32_0 = arith.constant 0 : i32
    return %arg0, %c0_i32 : i32, i32
  }
}

</mosaic_0001>

<bundles_post_ra>
// kernel: squeeze.2
= control target key start
LH: loop header
LB: loop body
LE: loop exit
PB: predicated region body
PF: predicated region fallthrough
CT: control target
= control target key end

     0   :  { %s37_s8 = smov 32   ;;  %s38_s9 = smov 64   ;;  %vm7_vm0 = vcmask 261120   ;;  %s55_s0 = inlined_call_operand.vmem [shape: f32[128], index: 0, kind: input, shape index: {}]   ;;  %s56_s1 = inlined_call_operand.vmem [shape: f32[4,32], index: 1, kind: output, shape index: {}]  }
   0x1   :  { %v4_v0 = vld [vmem:[%s55_s0] sm:$0x1]  ;;  %s36_s0 = smov 96  }
   0x2   :  { %5 = vst [vmem:[#allocation1] sm:$0x1] %v4_v0 }
   0x9   :  { %v9_v1 = vld [vmem:[#allocation1] sm:$0x1]  }
   0xa   :  { %v21_v2 = vld [vmem:[#allocation1] sm:$0x1]   ;;  %10 = vrot.lane.b32.xlu0 %v9_v1, %s36_s0 }
   0xb   :  { %22 = vrot.lane.b32.xlu1 %v21_v2, %s37_s8  ;;  %v15_v3 = vld [vmem:[#allocation1] sm:$0x1]  }
   0xc   :  { %v6_v4 = vld [vmem:[#allocation1] sm:$0x1]  }
   0xd   :  { %8 = vst.msk [vmem:[#allocation0] sm:$0x1] %vm7_vm0, %v6_v4  }
  0x12   :  { %16 = vrot.lane.b32.xlu0 %v15_v3, %s38_s9 }
  0x7c   :  { %v11_v5 = vpop.permute.xlu0 %10  }
  0x7d   :  { %v23_v6 = vpop.permute.xlu1 %22   ;;  %14 = vst.msk [vmem:[#allocation0 + $0x1] sm:$0x1] %vm7_vm0, %v11_v5  }
  0x7e   :  { %26 = vst.msk [vmem:[#allocation0 + $0x3] sm:$0x1] %vm7_vm0, %v23_v6  }
  0x84   :  { %v17_v7 = vpop.permute.xlu0 %16  }
  0x85   :  { %20 = vst.msk [vmem:[#allocation0 + $0x2] sm:$0x1] %vm7_vm0, %v17_v7  }
  0x8c   :  { %v29_v8 = vld [vmem:[#allocation0] sm:$0xf] }
  0x8d   :  { %32 = vst [vmem:[%s56_s1] sm:$0xf] %v29_v8 }

// kernel: tile.19
= control target key start
LH: loop header
LB: loop body
LE: loop exit
PB: predicated region body
PF: predicated region fallthrough
CT: control target
= control target key end

     0   :  { %s37_s8 = smov 32   ;;  %s38_s9 = smov 64   ;;  %vm7_vm0 = vcmask 261120   ;;  %vm13_vm1 = vcmask 1048320   ;;  %vm19_vm2 = vcmask 785920   ;;  %vm25_vm3 = vcmask 523520   ;;  %s55_s0 = inlined_call_operand.vmem [shape: f32[4,32], index: 0, kind: input, shape index: {}]   ;;  %s56_s1 = inlined_call_operand.vmem [shape: f32[1,128], index: 1, kind: output, shape index: {}]  }
   0x1   :  { %v4_v0 = vld [vmem:[%s55_s0] sm:$0xf]  ;;  %s36_s0 = smov 96  }
   0x2   :  { %5 = vst [vmem:[#allocation1] sm:$0xf] %v4_v0 }
   0x9   :  { %v10_v1 = vld [vmem:[#allocation1 + $0x3] sm:$0x1]   ;;  %v22_v2 = vld [vmem:[#allocation1 + $0x1] sm:$0x1]   ;;  %v16_v3 = vld [vmem:[#allocation1 + $0x2] sm:$0x1]  }
   0xa   :  { %11 = vrot.lane.b32.xlu0 %v10_v1, %s36_s0  ;;  %23 = vrot.lane.b32.xlu1 %v22_v2, %s37_s8  ;;  %v6_v4 = vld [vmem:[#allocation1] sm:$0x1]  }
   0xb   :  { %8 = vst.msk [vmem:[#allocation0] sm:$0x1] %vm7_vm0, %v6_v4  }
  0x12   :  { %17 = vrot.lane.b32.xlu0 %v16_v3, %s38_s9 }
  0x7c   :  { %v12_v5 = vpop.permute.xlu0 %11   ;;  %v24_v6 = vpop.permute.xlu1 %23  }
  0x7d   :  { %14 = vst.msk [vmem:[#allocation0] sm:$0x1] %vm13_vm1, %v12_v5  }
  0x84   :  { %v18_v7 = vpop.permute.xlu0 %17  }
  0x85   :  { %20 = vst.msk [vmem:[#allocation0] sm:$0x1] %vm19_vm2, %v18_v7  }
  0x86   :  { %26 = vst.msk [vmem:[#allocation0] sm:$0x1] %vm25_vm3, %v24_v6  }
  0x8d   :  { %v29_v8 = vld [vmem:[#allocation0] sm:$0x1] }
  0x8e   :  { %32 = vst [vmem:[%s56_s1] sm:$0x1] %v29_v8 }

// kernel: tile.18
= control target key start
LH: loop header
LB: loop body
LE: loop exit
PB: predicated region body
PF: predicated region fallthrough
CT: control target
= control target key end

     0   :  { %s22_s0 = inlined_call_operand.vmem [shape: f32[32], index: 0, kind: input, shape index: {}]   ;;  %s23_s1 = inlined_call_operand.vmem [shape: f32[4,32], index: 1, kind: output, shape index: {}]  }
   0x1   :  { %v4_v0 = vld [vmem:[%s22_s0] ss:$0 sm:$0xff] }
   0x2   :  { %5 = vst [vmem:[%s23_s1] sm:$0xf] %v4_v0 }

// kernel: up_conv_forward.3
= control target key start
LH: loop header
LB: loop body
LE: loop exit
PB: predicated region body
PF: predicated region fallthrough
CT: control target
= control target key end

     0   :  { %s422_s12 = smov 0   ;;  %s513_s0 = inlined_call_operand.vmem [shape: bf16[512,128], index: 0, kind: input, shape index: {}]   ;;  %s514_s1 = inlined_call_operand.vmem [shape: f32[1,128], index: 1, kind: input, shape index: {}]   ;;  %s515_s2 = inlined_call_operand.vmem [shape: f32[1,128], index: 2, kind: input, shape index: {}]   ;;  %s516_s3 = inlined_call_operand.vmem [shape: f32[512,128], index: 3, kind: output, shape index: {}]  }
   0x1 LB: > { %s334_s13 = sadd.s32 4294967295, %s400_s12   ;;  %p338_p0 = scmp.ge.s32.totalorder %s400_s12, 1  ;;  %s400_s12 = sphi %s422_s12, %s13_s12  }
   0x2   : > { %p138_p1 = scmp.lt.s32.totalorder %s400_s12, 5 }
   0x4   : > { %p139_p2 = pnand %p338_p0, %p138_p1 }
   0x5   : > { %s339_s14 = sshll.u32 (!%p139_p2), %s334_s13, 4 }
   0x6   : > { %142 = sbr.rel (%p139_p2) target bundleno = 39 (0x27), region = 32  ;;  %p163_p3 = scmp.lt.s32.totalorder (!%p139_p2), %s339_s14, 63 }
   0xb   : > { %s518_s14 = smov (!%p163_p3, %s339_s14), 63  ;;  %v441_v0 = vld [vmem:[%s514_s1] ss:$0 sm:$0xff] }
   0xc   : > { %s340_s15 = sshll.u32 %s518_s14, 2  ;;  %v449_v5 = vld [vmem:[%s515_s2] ss:$0 sm:$0xff]  ;;  %s342_s23 = sshll.u32 %s518_s14, 3 }
   0xd   : > { %s436_s18 = scalar_lea.vmem %s513_s0, %s340_s15  ;;  %s468_s26 = scalar_lea.vmem %s516_s3, %s342_s23 }
   0xe   : > { %v346_v1 = vld [vmem:[%s436_s18] sm:$0xff]   ;;  %v377_v2 = vld [vmem:[%s436_s18 + $0x8] sm:$0xff]   ;;  %v378_v3 = vld [vmem:[%s436_s18 + $0x10] sm:$0xff]  }
   0xf   : > { %v347_v4 = vunpack.c.l.bf16 %v346_v1  ;;  %v348_v6 = vunpack.c.h.bf16 %v346_v1  ;;  %v351_v7 = vunpack.c.l.bf16 %v377_v2  ;;  %v352_v8 = vunpack.c.h.bf16 %v377_v2  ;;  %v379_v9 = vld [vmem:[%s436_s18 + $0x18] sm:$0xff]   ;;  %v380_v30 = vld [vmem:[%s436_s18 + $0x20] sm:$0xff]   ;;  %v381_v31 = vld [vmem:[%s436_s18 + $0x28] sm:$0xff]  }
  0x10   : > { %v355_v10 = vunpack.c.l.bf16 %v378_v3  ;;  %v356_v11 = vunpack.c.h.bf16 %v378_v3  ;;  %v359_v12 = vunpack.c.l.bf16 %v379_v9  ;;  %v360_v13 = vunpack.c.h.bf16 %v379_v9  ;;  %v382_v36 = vld [vmem:[%s436_s18 + $0x30] sm:$0xff]   ;;  %v383_v37 = vld [vmem:[%s436_s18 + $0x38] sm:$0xff]  }
  0x11   : > { %v210_v14 = vmul.f32 %v441_v0, %v347_v4  ;;  %v211_v15 = vmul.f32 %v441_v0, %v348_v6  ;;  %v212_v16 = vmul.f32 %v441_v0, %v351_v7  ;;  %v213_v17 = vmul.f32 %v441_v0, %v352_v8 }
  0x12   : > { %v214_v18 = vmul.f32 %v441_v0, %v355_v10  ;;  %v215_v19 = vmul.f32 %v441_v0, %v356_v11  ;;  %v216_v20 = vmul.f32 %v441_v0, %v359_v12  ;;  %v217_v21 = vmul.f32 %v441_v0, %v360_v13 }
  0x13   : > { %v230_v22 = vadd.f32 %v449_v5, %v210_v14  ;;  %v231_v23 = vadd.f32 %v449_v5, %v211_v15  ;;  %v232_v24 = vadd.f32 %v449_v5, %v212_v16  ;;  %v233_v25 = vadd.f32 %v449_v5, %v213_v17 }
  0x14   : > { %v234_v26 = vadd.f32 %v449_v5, %v214_v18  ;;  %v235_v27 = vadd.f32 %v449_v5, %v215_v19  ;;  %v236_v28 = vadd.f32 %v449_v5, %v216_v20  ;;  %v237_v29 = vadd.f32 %v449_v5, %v217_v21 }
  0x15   : > { %v246_v32 = vmax.f32 %v230_v22, 0.0  ;;  %v247_v33 = vmax.f32 %v231_v23, 0.0  ;;  %v248_v34 = vmax.f32 %v232_v24, 0.0  ;;  %v249_v35 = vmax.f32 %v233_v25, 0.0 }
  0x16   : > { %v250_v38 = vmax.f32 %v234_v26, 0.0  ;;  %v251_v39 = vmax.f32 %v235_v27, 0.0  ;;  %v252_v40 = vmax.f32 %v236_v28, 0.0  ;;  %v253_v41 = vmax.f32 %v237_v29, 0.0 }
  0x17   : > { %262 = vst [vmem:[%s468_s26] sm:$0xff] %v246_v32  ;;  %v363_v42 = vunpack.c.l.bf16 %v380_v30  ;;  %v364_v43 = vunpack.c.h.bf16 %v380_v30  ;;  %v367_v44 = vunpack.c.l.bf16 %v381_v31  ;;  %v368_v45 = vunpack.c.h.bf16 %v381_v31 }
  0x18   : > { %263 = vst [vmem:[%s468_s26 + $0x8] sm:$0xff] %v247_v33  ;;  %v371_v46 = vunpack.c.l.bf16 %v382_v36  ;;  %v372_v47 = vunpack.c.h.bf16 %v382_v36  ;;  %v375_v48 = vunpack.c.l.bf16 %v383_v37  ;;  %v376_v49 = vunpack.c.h.bf16 %v383_v37 }
  0x19   : > { %264 = vst [vmem:[%s468_s26 + $0x10] sm:$0xff] %v248_v34  ;;  %v218_v50 = vmul.f32 %v441_v0, %v363_v42  ;;  %v219_v51 = vmul.f32 %v441_v0, %v364_v43  ;;  %v220_v52 = vmul.f32 %v441_v0, %v367_v44  ;;  %v221_v53 = vmul.f32 %v441_v0, %v368_v45 }
  0x1a   : > { %265 = vst [vmem:[%s468_s26 + $0x18] sm:$0xff] %v249_v35  ;;  %v222_v54 = vmul.f32 %v441_v0, %v371_v46  ;;  %v223_v55 = vmul.f32 %v441_v0, %v372_v47  ;;  %v224_v56 = vmul.f32 %v441_v0, %v375_v48  ;;  %v225_v57 = vmul.f32 %v441_v0, %v376_v49 }
  0x1b   : > { %266 = vst [vmem:[%s468_s26 + $0x20] sm:$0xff] %v250_v38  ;;  %v238_v58 = vadd.f32 %v449_v5, %v218_v50  ;;  %v239_v59 = vadd.f32 %v449_v5, %v219_v51  ;;  %v240_v60 = vadd.f32 %v449_v5, %v220_v52  ;;  %v241_v61 = vadd.f32 %v449_v5, %v221_v53 }
  0x1c   : > { %267 = vst [vmem:[%s468_s26 + $0x28] sm:$0xff] %v251_v39  ;;  %v242_v62 = vadd.f32 %v449_v5, %v222_v54  ;;  %v243_v63 = vadd.f32 %v449_v5, %v223_v55  ;;  %v244_v3 = vadd.f32 %v449_v5, %v224_v56  ;;  %v245_v6 = vadd.f32 %v449_v5, %v225_v57 }
  0x1d   : > { %268 = vst [vmem:[%s468_s26 + $0x30] sm:$0xff] %v252_v40  ;;  %v254_v0 = vmax.f32 %v238_v58, 0.0  ;;  %v255_v1 = vmax.f32 %v239_v59, 0.0  ;;  %v256_v2 = vmax.f32 %v240_v60, 0.0  ;;  %v257_v4 = vmax.f32 %v241_v61, 0.0 }
  0x1e   : > { %269 = vst [vmem:[%s468_s26 + $0x38] sm:$0xff] %v253_v41  ;;  %v258_v7 = vmax.f32 %v242_v62, 0.0  ;;  %v259_v8 = vmax.f32 %v243_v63, 0.0  ;;  %v260_v9 = vmax.f32 %v244_v3, 0.0  ;;  %v261_v10 = vmax.f32 %v245_v6, 0.0 }
  0x1f   : > { %270 = vst [vmem:[%s468_s26 + $0x40] sm:$0xff] %v254_v0 }
  0x20   : > { %271 = vst [vmem:[%s468_s26 + $0x48] sm:$0xff] %v255_v1 }
  0x21   : > { %272 = vst [vmem:[%s468_s26 + $0x50] sm:$0xff] %v256_v2 }
  0x22   : > { %273 = vst [vmem:[%s468_s26 + $0x58] sm:$0xff] %v257_v4 }
  0x23   : > { %274 = vst [vmem:[%s468_s26 + $0x60] sm:$0xff] %v258_v7 }
  0x24   : > { %275 = vst [vmem:[%s468_s26 + $0x68] sm:$0xff] %v259_v8 }
  0x25   : > { %276 = vst [vmem:[%s468_s26 + $0x70] sm:$0xff] %v260_v9 }
  0x26   : > { %277 = vst [vmem:[%s468_s26 + $0x78] sm:$0xff] %v261_v10 }
  0x27 PF: > { %s13_s12 = sadd.s32 1, %s400_s12  }
  0x28   : > { %p10_p4 = scmp.ge.s32.totalorder %s13_s12, 6  }
  0x2a   :  { %12 = sbr.rel (!%p10_p4) target bundleno = 1 (0x1), region = 62 }

// kernel: up_conv_forward.2
= control target key start
LH: loop header
LB: loop body
LE: loop exit
PB: predicated region body
PF: predicated region fallthrough
CT: control target
= control target key end

     0   :  { %s1351_s12 = smov 0   ;;  %s1613_s0 = inlined_call_operand.vmem [shape: bf16[4,10,18,4], index: 0, kind: input, shape index: {}]   ;;  %s1614_s1 = inlined_call_operand.vmem [shape: bf16[36,128], index: 1, kind: input, shape index: {}]   ;;  %s1615_s2 = inlined_call_operand.vmem [shape: bf16[4,128,128], index: 2, kind: output, shape index: {0}]   ;;  %s1616_s3 = inlined_call_operand.vmem [shape: f32[4,2,128], index: 3, kind: output, shape index: {1}]  }
   0x1 LB: > { %s1052_s13 = sadd.s32 4294967295, %s1325_s12   ;;  %p1056_p0 = scmp.ge.s32.totalorder %s1325_s12, 1  ;;  %s1325_s12 = sphi %s1351_s12, %s14_s12  }
   0x2   : > { %p140_p1 = scmp.lt.s32.totalorder %s1325_s12, 5 }
   0x4   : > { %p141_p2 = pnand %p1056_p0, %p140_p1 }
   0x5   : > { %p168_p3 = scmp.lt.s32.totalorder (!%p141_p2), %s1052_s13, 3  ;;  %s1327_s18 = smov (!%p141_p2), 4  }
   0x6   : > { %144 = sbr.rel (%p141_p2) target bundleno = 496 (0x1f0), region = 28  ;;  %s1328_s19 = smov (!%p141_p2), 8  }
   0x7   : > { %s1329_s20 = smov (!%p141_p2), 24   ;;  %s1330_s21 = smov (!%p141_p2), 12  }
   0xb   : > { %s1618_s13 = smov (!%p168_p3, %s1052_s13), 3  ;;  %vm513_vm0 = vcmask 31744   ;;  %vm562_vm1 = vcmask 64512   ;;  %vm708_vm2 = vcmask 1046528   ;;  %vm595_vm3 = vsmask.f32 7424 }
   0xc   : > { %s1306_s14 = smul.u32 120, %s1618_s13  ;;  %vm820_vm4 = vcmask 1041408   ;;  %vm749_vm5 = vcmask 97280   ;;  %vm766_vm6 = vcmask 195584   ;;  %vm803_vm7 = vcmask 293888   ;;  %s1223_s28 = sshll.u32 %s1618_s13, 6 }
   0xd   : > { %s1596_s4 = scalar_lea.vmem %s1615_s2, %s1223_s28  ;;  %s1060_s5 = sshll.u32 %s1618_s13, 1  ;;  %vm963_vm8 = vcmask 1040384  }
   0xe   : > { %s1365_s17 = scalar_lea.vmem %s1613_s0, %s1306_s14  ;;  %s181_s8 = scalar_lea.vmem %s1616_s3, %s1060_s5 }
   0xf   : > { %v1232_v0 = vld [vmem:[%s1365_s17 + $0xc] sm:$0xff]  ;;  %v1063_v1 = vld [vmem:[%s1365_s17 + $0x14] sm:$0x1]  ;;  %v1087_v3 = vld [vmem:[%s1365_s17 + $0x20] sm:$0x1] }
  0x10   : > { %v347_v2 = vunpack.c.l.b16 %v1063_v1  ;;  %385 = vrot.lane.b32.xlu0 %v1232_v0, %s1327_s18  ;;  %v1234_v4 = vld [vmem:[%s1365_s17 + $0x24] sm:$0xff]  ;;  %v443_v6 = vunpack.c.l.b16 %v1087_v3  ;;  %v1240_v7 = vld [vmem:[%s1365_s17 + $0x18] sm:$0xff]  ;;  %v1069_v8 = vld [vmem:[%s1365_s17 + $0x2c] sm:$0x1] }
  0x11   : > { %393 = vrot.lane.b32.xlu2 %v1234_v4, %s1327_s18  ;;  %v1242_v9 = vld [vmem:[%s1365_s17 + $0x30] sm:$0xff]  ;;  %v1093_v11 = vld [vmem:[%s1365_s17 + $0x38] sm:$0x1]  ;;  %v353_v12 = vunpack.c.l.b16 %v1069_v8  ;;  %v1236_v16 = vld [vmem:[%s1365_s17 + $0x3c] sm:$0xff] }
  0x12   : > { %v370_v5 = vpack.c.b16 %v347_v2, %v347_v2  ;;  %v466_v10 = vpack.c.b16 %v443_v6, %v443_v6  ;;  %v449_v13 = vunpack.c.l.b16 %v1093_v11  ;;  %v1099_v17 = vld [vmem:[%s1365_s17 + $0x50] sm:$0x1]  ;;  %v1075_v18 = vld [vmem:[%s1365_s17 + $0x44] sm:$0x1]  ;;  %v1244_v21 = vld [vmem:[%s1365_s17 + $0x48] sm:$0xff] }
  0x13   : > { %v374_v14 = vpack.c.b16 %v353_v12, %v353_v12  ;;  %v455_v19 = vunpack.c.l.b16 %v1099_v17  ;;  %v359_v20 = vunpack.c.l.b16 %v1075_v18  ;;  %v1066_v24 = vld [vmem:[%s1365_s17 + $0x20] sm:$0x1]  ;;  %v1233_v26 = vld [vmem:[%s1365_s17 + $0x18] sm:$0xff]  ;;  %v1241_v28 = vld [vmem:[%s1365_s17 + $0x24] sm:$0xff] }
  0x14   : > { %387 = vrot.lane.b32.xlu1 %v370_v5, %s1327_s18  ;;  %v470_v15 = vpack.c.b16 %v449_v13, %v449_v13  ;;  %v350_v25 = vunpack.c.l.b16 %v1066_v24  ;;  %v1090_v29 = vld [vmem:[%s1365_s17 + $0x2c] sm:$0x1]  ;;  %v1238_v31 = vld [vmem:[%s1365_s17 + $0x54] sm:$0xff]  ;;  %v1081_v32 = vld [vmem:[%s1365_s17 + $0x5c] sm:$0x1] }
  0x15   : > { %v474_v22 = vpack.c.b16 %v455_v19, %v455_v19  ;;  %v378_v23 = vpack.c.b16 %v359_v20, %v359_v20  ;;  %v446_v30 = vunpack.c.l.b16 %v1090_v29  ;;  %v1246_v33 = vld [vmem:[%s1365_s17 + $0x60] sm:$0xff]  ;;  %v365_v35 = vunpack.c.l.b16 %v1081_v32  ;;  %v1105_v36 = vld [vmem:[%s1365_s17 + $0x68] sm:$0x1]  ;;  %v1235_v39 = vld [vmem:[%s1365_s17 + $0x30] sm:$0xff] }
  0x16   : > { %v372_v27 = vpack.c.b16 %v350_v25, %v350_v25  ;;  %v461_v37 = vunpack.c.l.b16 %v1105_v36  ;;  %v1072_v41 = vld [vmem:[%s1365_s17 + $0x38] sm:$0x1]  ;;  %v1243_v43 = vld [vmem:[%s1365_s17 + $0x3c] sm:$0xff]  ;;  %v1096_v44 = vld [vmem:[%s1365_s17 + $0x44] sm:$0x1] }
  0x17   : > { %v468_v34 = vpack.c.b16 %v446_v30, %v446_v30  ;;  %v382_v38 = vpack.c.b16 %v365_v35, %v365_v35  ;;  %v356_v42 = vunpack.c.l.b16 %v1072_v41  ;;  %v1237_v45 = vld [vmem:[%s1365_s17 + $0x48] sm:$0xff]  ;;  %v1078_v47 = vld [vmem:[%s1365_s17 + $0x50] sm:$0x1]  ;;  %v452_v48 = vunpack.c.l.b16 %v1096_v44  ;;  %v1102_v51 = vld [vmem:[%s1365_s17 + $0x5c] sm:$0x1] }
  0x18   : > { %481 = vrot.lane.b32.xlu0 %v1240_v7, %s1328_s19  ;;  %v478_v40 = vpack.c.b16 %v461_v37, %v461_v37  ;;  %v362_v49 = vunpack.c.l.b16 %v1078_v47  ;;  %v1245_v53 = vld [vmem:[%s1365_s17 + $0x54] sm:$0xff]  ;;  %v458_v54 = vunpack.c.l.b16 %v1102_v51  ;;  %v1084_v56 = vld [vmem:[%s1365_s17 + $0x68] sm:$0x1]  ;;  %v1247_v57 = vld [vmem:[%s1365_s17 + $0x6c] sm:$0xff] }
  0x19   : > { %489 = vrot.lane.b32.xlu2 %v1242_v9, %s1328_s19  ;;  %v376_v46 = vpack.c.b16 %v356_v42, %v356_v42  ;;  %v472_v50 = vpack.c.b16 %v452_v48, %v452_v48  ;;  %v1239_v58 = vld [vmem:[%s1365_s17 + $0x60] sm:$0xff]  ;;  %v368_v59 = vunpack.c.l.b16 %v1084_v56  ;;  %v1108_v60 = vld [vmem:[%s1365_s17 + $0x74] sm:$0x1]  ;;  %v185_v3 = vld [vmem:[%s1365_s17 + $0x8] sm:$0x1] }
  0x1a   : > { %v380_v52 = vpack.c.b16 %v362_v49, %v362_v49  ;;  %v476_v55 = vpack.c.b16 %v458_v54, %v458_v54  ;;  %v464_v61 = vunpack.c.l.b16 %v1108_v60  ;;  %v1226_v4 = vld [vmem:[%s1365_s17 + $0x18] sm:$0xff]  ;;  %v283_v6 = vunpack.c.l.b16 %v185_v3  ;;  %v1224_v7 = vld [vmem:[%s1365_s17] sm:$0xff]  ;;  %v1228_v41 = vld [vmem:[%s1365_s17 + $0x30] sm:$0xff] }
  0x1b   : > { %v384_v62 = vpack.c.b16 %v368_v59, %v368_v59  ;;  %v191_v8 = vld [vmem:[%s1365_s17 + $0x20] sm:$0x1]  ;;  %v197_v37 = vld [vmem:[%s1365_s17 + $0x38] sm:$0x1]  ;;  %v1225_v59 = vld [vmem:[%s1365_s17 + $0xc] sm:$0xff] }
  0x1c   : > { %483 = vrot.lane.b32.xlu1 %v466_v10, %s1328_s19  ;;  %v480_v63 = vpack.c.b16 %v464_v61, %v464_v61  ;;  %v306_v11 = vpack.c.b16 %v283_v6, %v283_v6  ;;  %v295_v42 = vunpack.c.l.b16 %v197_v37 }
  0x20   : > { %395 = vrot.lane.b32.xlu0 %v374_v14, %s1327_s18  ;;  %v289_v14 = vunpack.c.l.b16 %v191_v8 }
  0x21   : > { %491 = vrot.lane.b32.xlu2 %v470_v15, %s1328_s19 }
  0x24   : > { %401 = vrot.lane.b32.xlu1 %v1236_v16, %s1327_s18 }
  0x28   : > { %497 = vrot.lane.b32.xlu0 %v1244_v21, %s1328_s19 }
  0x29   : > { %499 = vrot.lane.b32.xlu2 %v474_v22, %s1328_s19 }
  0x2c   : > { %403 = vrot.lane.b32.xlu1 %v378_v23, %s1327_s18  ;;  %v310_v23 = vpack.c.b16 %v289_v14, %v289_v14 }
  0x30   : > { %389 = vrot.lane.b32.xlu0 %v1233_v26, %s1327_s18 }
  0x31   : > { %391 = vrot.lane.b32.xlu2 %v372_v27, %s1327_s18 }
  0x34   : > { %485 = vrot.lane.b32.xlu1 %v1241_v28, %s1328_s19 }
  0x38   : > { %409 = vrot.lane.b32.xlu0 %v1238_v31, %s1327_s18 }
  0x39   : > { %505 = vrot.lane.b32.xlu2 %v1246_v33, %s1328_s19 }
  0x3c   : > { %487 = vrot.lane.b32.xlu1 %v468_v34, %s1328_s19 }
  0x40   : > { %411 = vrot.lane.b32.xlu0 %v382_v38, %s1327_s18 }
  0x41   : > { %397 = vrot.lane.b32.xlu2 %v1235_v39, %s1327_s18 }
  0x44   : > { %507 = vrot.lane.b32.xlu1 %v478_v40, %s1328_s19 }
  0x48   : > { %493 = vrot.lane.b32.xlu0 %v1243_v43, %s1328_s19 }
  0x49   : > { %405 = vrot.lane.b32.xlu2 %v1237_v45, %s1327_s18 }
  0x4c   : > { %399 = vrot.lane.b32.xlu1 %v376_v46, %s1327_s18 }
  0x50   : > { %495 = vrot.lane.b32.xlu0 %v472_v50, %s1328_s19  ;;  %v314_v50 = vpack.c.b16 %v295_v42, %v295_v42 }
  0x51   : > { %407 = vrot.lane.b32.xlu2 %v380_v52, %s1327_s18 }
  0x54   : > { %501 = vrot.lane.b32.xlu1 %v1245_v53, %s1328_s19 }
  0x58   : > { %503 = vrot.lane.b32.xlu0 %v476_v55, %s1328_s19 }
  0x59   : > { %509 = vrot.lane.b32.xlu2 %v1247_v57, %s1328_s19 }
  0x5c   : > { %413 = vrot.lane.b32.xlu1 %v1239_v58, %s1327_s18 }
  0x60   : > { %415 = vrot.lane.b32.xlu0 %v384_v62, %s1327_s18 }
  0x64   : > { %511 = vrot.lane.b32.xlu1 %v480_v63, %s1328_s19 }
  0x6b   : > { %v394_v0 = vpop.permute.xlu2 %393 }
  0x6c   : > { %v528_v10 = vsel %vm513_vm0, %v1226_v4, %v394_v0  ;;  %v188_v0 = vld [vmem:[%s1365_s17 + $0x14] sm:$0x1] }
  0x6d   : > { %v286_v6 = vunpack.c.l.b16 %v188_v0 }
  0x73   : > { %v490_v1 = vpop.permute.xlu2 %489 }
  0x74   : > { %v1441_v16 = vsel %vm562_vm1, %v528_v10, %v490_v1 }
  0x75   : > { %v618_v24 = vshll.u32 %v1441_v16, 16  ;;  %v616_v33 = vshrl.u32 %v1441_v16, 16  ;;  %v715_v46 = vrot.slane %v1441_v16, 1 }
  0x77   : > { %v620_v34 = vrot.slane %v618_v24, 1 }
  0x79   : > { %v621_v45 = vor.u32 %v620_v34, %v616_v33 }
  0x7b   : > { %v492_v9 = vpop.permute.xlu2 %491 }
  0x82   : > { %v386_v2 = vpop.permute.xlu0 %385 }
  0x83   : > { %v516_v12 = vsel %vm513_vm0, %v1224_v7, %v386_v2  ;;  %v500_v32 = vpop.permute.xlu2 %499 }
  0x86   : > { %v388_v5 = vpop.permute.xlu1 %387 }
  0x87   : > { %v519_v18 = vsel %vm513_vm0, %v306_v11, %v388_v5  ;;  %v308_v11 = vpack.c.b16 %v286_v6, %v286_v6 }
  0x8a   : > { %v482_v13 = vpop.permute.xlu0 %481 }
  0x8b   : > { %v1438_v15 = vsel %vm562_vm1, %v516_v12, %v482_v13  ;;  %v392_v54 = vpop.permute.xlu2 %391  ;;  %v1230_v12 = vld [vmem:[%s1365_s17 + $0x48] sm:$0xff]  ;;  %v203_v13 = vld [vmem:[%s1365_s17 + $0x50] sm:$0x1] }
  0x8c   : > { %v598_v17 = vshll.u32 %v1438_v15, 16  ;;  %v596_v20 = vshrl.u32 %v1438_v15, 16  ;;  %v709_v25 = vrot.slane %v1438_v15, 1 }
  0x8e   : > { %v484_v19 = vpop.permute.xlu1 %483  ;;  %v600_v21 = vrot.slane %v598_v17, 1 }
  0x8f   : > { %v566_v22 = vsel %vm562_vm1, %v519_v18, %v484_v19  ;;  %v301_v18 = vunpack.c.l.b16 %v203_v13  ;;  %v525_v19 = vsel %vm513_vm0, %v308_v11, %v392_v54 }
  0x90   : > { %v602_v26 = vshll.u32 %v566_v22, 16  ;;  %v710_v27 = vrot.slane %v566_v22, 1  ;;  %v601_v28 = vor.u32 %v600_v21, %v596_v20 }
  0x92   : > { %v604_v29 = vrot.slane %v602_v26, 1  ;;  %v711_v30 = vsel %vm708_vm2, %v709_v25, %v710_v27  ;;  %v396_v31 = vpop.permute.xlu0 %395  ;;  %v318_v25 = vpack.c.b16 %v301_v18, %v301_v18 }
  0x93   : > { %733 = vrot.lane.b32.xlu0 %v711_v30, %s1329_s20  ;;  %v531_v35 = vsel %vm513_vm0, %v310_v23, %v396_v31  ;;  %v506_v10 = vpop.permute.xlu2 %505 }
  0x94   : > { %v605_v36 = vsel %vm595_vm3, %v601_v28, %v604_v29  ;;  %v574_v38 = vsel %vm562_vm1, %v531_v35, %v492_v9 }
  0x95   : > { %676 = vrot.lane.b32.xlu2 %v605_v36, %s1330_s21  ;;  %v622_v39 = vshll.u32 %v574_v38, 16  ;;  %v716_v44 = vrot.slane %v574_v38, 1  ;;  %v1227_v38 = vld [vmem:[%s1365_s17 + $0x24] sm:$0xff] }
  0x96   : > { %v402_v40 = vpop.permute.xlu1 %401 }
  0x97   : > { %v624_v43 = vrot.slane %v622_v39, 1  ;;  %v540_v48 = vsel %vm513_vm0, %v1228_v41, %v402_v40  ;;  %v717_v52 = vsel %vm708_vm2, %v715_v46, %v716_v44 }
  0x99   : > { %v625_v47 = vsel %vm595_vm3, %v621_v45, %v624_v43  ;;  %v194_v45 = vld [vmem:[%s1365_s17 + $0x2c] sm:$0x1] }
  0x9a   : > { %v498_v49 = vpop.permute.xlu0 %497  ;;  %680 = vrot.lane.b32.xlu1 %v625_v47, %s1330_s21 }
  0x9b   : > { %v1463_v51 = vsel %vm562_vm1, %v540_v48, %v498_v49  ;;  %v398_v26 = vpop.permute.xlu2 %397 }
  0x9c   : > { %v638_v53 = vshll.u32 %v1463_v51, 16  ;;  %v636_v60 = vshrl.u32 %v1463_v51, 16  ;;  %v721_v61 = vrot.slane %v1463_v51, 1  ;;  %v534_v46 = vsel %vm513_vm0, %v1227_v38, %v398_v26 }
  0x9d   : > { %737 = vrot.lane.b32.xlu2 %v717_v52, %s1329_s20 }
  0x9e   : > { %v404_v55 = vpop.permute.xlu1 %403  ;;  %v640_v56 = vrot.slane %v638_v53, 1  ;;  %v292_v53 = vunpack.c.l.b16 %v194_v45 }
  0x9f   : > { %v543_v57 = vsel %vm513_vm0, %v314_v50, %v404_v55 }
  0xa0   : > { %v582_v58 = vsel %vm562_vm1, %v543_v57, %v500_v32  ;;  %v641_v4 = vor.u32 %v640_v56, %v636_v60  ;;  %v312_v60 = vpack.c.b16 %v292_v53, %v292_v53 }
  0xa1   : > { %v642_v62 = vshll.u32 %v582_v58, 16  ;;  %v722_v63 = vrot.slane %v582_v58, 1  ;;  %v200_v58 = vld [vmem:[%s1365_s17 + $0x44] sm:$0x1] }
  0xa2   : > { %v390_v2 = vpop.permute.xlu0 %389 }
  0xa3   : > { %v644_v1 = vrot.slane %v642_v62, 1  ;;  %v723_v3 = vsel %vm708_vm2, %v721_v61, %v722_v63  ;;  %v522_v5 = vsel %vm513_vm0, %v1225_v59, %v390_v2  ;;  %v406_v47 = vpop.permute.xlu2 %405  ;;  %v1229_v61 = vld [vmem:[%s1365_s17 + $0x3c] sm:$0xff]  ;;  %v298_v62 = vunpack.c.l.b16 %v200_v58 }
  0xa4   : > { %741 = vrot.lane.b32.xlu1 %v723_v3, %s1329_s20 }
  0xa5   : > { %v645_v7 = vsel %vm595_vm3, %v641_v4, %v644_v1  ;;  %v546_v4 = vsel %vm513_vm0, %v1229_v61, %v406_v47  ;;  %v1249_v61 = vld [vmem:[%s1614_s1 + $0x8] sm:$0xff] }
  0xa6   : > { %v486_v8 = vpop.permute.xlu1 %485  ;;  %684 = vrot.lane.b32.xlu0 %v645_v7, %s1330_s21 }
  0xa7   : > { %v1480_v9 = vsel %vm562_vm1, %v522_v5, %v486_v8 }
  0xa8   : > { %v608_v14 = vshll.u32 %v1480_v9, 16  ;;  %v606_v27 = vshrl.u32 %v1480_v9, 16  ;;  %v712_v28 = vrot.slane %v1480_v9, 1 }
  0xaa   : > { %v410_v17 = vpop.permute.xlu0 %409  ;;  %v610_v21 = vrot.slane %v608_v14, 1 }
  0xab   : > { %v552_v20 = vsel %vm513_vm0, %v1230_v12, %v410_v17  ;;  %v408_v3 = vpop.permute.xlu2 %407 }
  0xac   : > { %v1488_v23 = vsel %vm562_vm1, %v552_v20, %v506_v10  ;;  %v611_v34 = vor.u32 %v610_v21, %v606_v27  ;;  %v316_v10 = vpack.c.b16 %v298_v62, %v298_v62  ;;  %v206_v21 = vld [vmem:[%s1365_s17 + $0x5c] sm:$0x1]  ;;  %v1248_v62 = vld [vmem:[%s1614_s1] sm:$0xff] }
  0xad   : > { %v658_v31 = vshll.u32 %v1488_v23, 16  ;;  %v656_v39 = vshrl.u32 %v1488_v23, 16  ;;  %v727_v48 = vrot.slane %v1488_v23, 1  ;;  %v304_v27 = vunpack.c.l.b16 %v206_v21 }
  0xae   : > { %v488_v22 = vpop.permute.xlu1 %487 }
  0xaf   : > { %v570_v24 = vsel %vm562_vm1, %v525_v19, %v488_v22  ;;  %v660_v40 = vrot.slane %v658_v31, 1  ;;  %v549_v19 = vsel %vm513_vm0, %v316_v10, %v408_v3  ;;  %v320_v38 = vpack.c.b16 %v304_v27, %v304_v27 }
  0xb0   : > { %v612_v29 = vshll.u32 %v570_v24, 16  ;;  %v713_v30 = vrot.slane %v570_v24, 1 }
  0xb1   : > { %v661_v50 = vor.u32 %v660_v40, %v656_v39 }
  0xb2   : > { %v614_v32 = vrot.slane %v612_v29, 1  ;;  %v714_v33 = vsel %vm708_vm2, %v712_v28, %v713_v30  ;;  %v412_v35 = vpop.permute.xlu0 %411 }
  0xb3   : > { %735 = vrot.lane.b32.xlu0 %v714_v33, %s1329_s20  ;;  %v555_v36 = vsel %vm513_vm0, %v318_v25, %v412_v35  ;;  %v1231_v25 = vld [vmem:[%s1365_s17 + $0x54] sm:$0xff]  ;;  %v510_v31 = vpop.permute.xlu2 %509 }
  0xb4   : > { %v615_v37 = vsel %vm595_vm3, %v611_v34, %v614_v32 }
  0xb5   : > { %678 = vrot.lane.b32.xlu2 %v615_v37, %s1330_s21 }
  0xb6   : > { %v508_v41 = vpop.permute.xlu1 %507 }
  0xb7   : > { %v590_v42 = vsel %vm562_vm1, %v555_v36, %v508_v41 }
  0xb8   : > { %v662_v43 = vshll.u32 %v590_v42, 16  ;;  %v728_v44 = vrot.slane %v590_v42, 1 }
  0xba   : > { %v664_v49 = vrot.slane %v662_v43, 1  ;;  %v494_v52 = vpop.permute.xlu0 %493  ;;  %v729_v56 = vsel %vm708_vm2, %v727_v48, %v728_v44 }
  0xbb   : > { %v1506_v54 = vsel %vm562_vm1, %v534_v46, %v494_v52  ;;  %v787_v46 = vld [vmem:[%s1614_s1 + $0x10] sm:$0x3] }
  0xbc   : > { %v665_v55 = vsel %vm595_vm3, %v661_v50, %v664_v49  ;;  %v628_v59 = vshll.u32 %v1506_v54, 16  ;;  %v626_v63 = vshrl.u32 %v1506_v54, 16  ;;  %v718_v6 = vrot.slane %v1506_v54, 1 }
  0xbd   : > { %688 = vrot.lane.b32.xlu1 %v665_v55, %s1330_s21  ;;  %745 = vrot.lane.b32.xlu2 %v729_v56, %s1329_s20  ;;  %v797_v49 = vunpack.c.l.b16 %v787_v46 }
  0xbe   : > { %v400_v57 = vpop.permute.xlu1 %399  ;;  %v630_v0 = vrot.slane %v628_v59, 1 }
  0xbf   : > { %v537_v1 = vsel %vm513_vm0, %v312_v60, %v400_v57  ;;  %v800_v55 = vpack.c.b16 %v797_v49, %v797_v49 }
  0xc0   : > { %v631_v17 = vor.u32 %v630_v0, %v626_v63 }
  0xc1   : > { %v822_v59 = vsel %vm820_vm4, %v800_v55, 0 }
  0xc2   : > { %v496_v2 = vpop.permute.xlu0 %495  ;;  %829 = vmatpush.bf16.msra.mxu0 %v822_v59  ;;  %1297 = vmatpush.bf16.msra.mxu1 %v822_v59 }
  0xc3   : > { %v578_v5 = vsel %vm562_vm1, %v537_v1, %v496_v2  ;;  %1298 = vmatpush.bf16.msra.mxu2 %v822_v59  ;;  %1299 = vmatpush.bf16.msra.mxu3 %v822_v59 }
  0xc4   : > { %v632_v7 = vshll.u32 %v578_v5, 16  ;;  %v719_v8 = vrot.slane %v578_v5, 1 }
  0xc6   : > { %v502_v11 = vpop.permute.xlu1 %501  ;;  %v634_v12 = vrot.slane %v632_v7, 1  ;;  %v720_v14 = vsel %vm708_vm2, %v718_v6, %v719_v8  ;;  %830 = vmatpush.bf16.msra.mxu0 %v1249_v61  ;;  %1300 = vmatpush.bf16.msra.mxu1 %v1249_v61 }
  0xc7   : > { %v1521_v13 = vsel %vm562_vm1, %v546_v4, %v502_v11  ;;  %739 = vrot.lane.b32.xlu1 %v720_v14, %s1329_s20  ;;  %1301 = vmatpush.bf16.msra.mxu2 %v1249_v61 }
  0xc8   : > { %v648_v18 = vshll.u32 %v1521_v13, 16  ;;  %v635_v20 = vsel %vm595_vm3, %v631_v17, %v634_v12  ;;  %v646_v28 = vshrl.u32 %v1521_v13, 16  ;;  %v724_v33 = vrot.slane %v1521_v13, 1  ;;  %1302 = vmatpush.bf16.msra.mxu3 %v1249_v61 }
  0xc9   : > { %682 = vrot.lane.b32.xlu0 %v635_v20, %s1330_s21 }
  0xca   : > { %v650_v22 = vrot.slane %v648_v18, 1  ;;  %v504_v24 = vpop.permute.xlu0 %503  ;;  %831 = vmatpush.bf16.msra.mxu0 %v1248_v62  ;;  %1303 = vmatpush.bf16.msra.mxu1 %v1248_v62 }
  0xcb   : > { %v586_v26 = vsel %vm562_vm1, %v549_v19, %v504_v24  ;;  %1304 = vmatpush.bf16.msra.mxu2 %v1248_v62 }
  0xcc   : > { %v652_v29 = vshll.u32 %v586_v26, 16  ;;  %v725_v30 = vrot.slane %v586_v26, 1  ;;  %v651_v36 = vor.u32 %v650_v22, %v646_v28  ;;  %1305 = vmatpush.bf16.msra.mxu3 %v1248_v62 }
  0xce   : > { %v414_v32 = vpop.permute.xlu1 %413  ;;  %v654_v34 = vrot.slane %v652_v29, 1  ;;  %v726_v39 = vsel %vm708_vm2, %v724_v33, %v725_v30 }
  0xcf   : > { %v558_v35 = vsel %vm513_vm0, %v1231_v25, %v414_v32 }
  0xd0   : > { %v1536_v37 = vsel %vm562_vm1, %v558_v35, %v510_v31  ;;  %v655_v40 = vsel %vm595_vm3, %v651_v36, %v654_v34 }
  0xd1   : > { %v668_v41 = vshll.u32 %v1536_v37, 16  ;;  %743 = vrot.lane.b32.xlu0 %v726_v39, %s1329_s20  ;;  %686 = vrot.lane.b32.xlu2 %v655_v40, %s1330_s21  ;;  %v666_v47 = vshrl.u32 %v1536_v37, 16  ;;  %v730_v50 = vrot.slane %v1536_v37, 1 }
  0xd2   : > { %v416_v42 = vpop.permute.xlu0 %415 }
  0xd3   : > { %v561_v43 = vsel %vm513_vm0, %v320_v38, %v416_v42  ;;  %v670_v44 = vrot.slane %v668_v41, 1 }
  0xd5   : > { %v671_v58 = vor.u32 %v670_v44, %v666_v47 }
  0xd6   : > { %v512_v45 = vpop.permute.xlu1 %511 }
  0xd7   : > { %v594_v48 = vsel %vm562_vm1, %v561_v43, %v512_v45 }
  0xd8   : > { %v672_v52 = vshll.u32 %v594_v48, 16  ;;  %v731_v53 = vrot.slane %v594_v48, 1 }
  0xda   : > { %v674_v56 = vrot.slane %v672_v52, 1  ;;  %v732_v57 = vsel %vm708_vm2, %v730_v50, %v731_v53 }
  0xdb   : > { %747 = vrot.lane.b32.xlu2 %v732_v57, %s1329_s20 }
  0xdc   : > { %v675_v60 = vsel %vm595_vm3, %v671_v58, %v674_v56 }
  0xdd   : > { %690 = vrot.lane.b32.xlu1 %v675_v60, %s1330_s21 }
  0xef   : > { %v677_v63 = vpop.permute.xlu2 %676 }
  0xf0   : > { %v751_v0 = vsel %vm749_vm5, %v1438_v15, %v677_v63 }
  0xf7   : > { %v738_v4 = vpop.permute.xlu2 %737 }
 0x105   : > { %v734_v1 = vpop.permute.xlu0 %733 }
 0x106   : > { %v768_v2 = vsel %vm766_vm6, %v751_v0, %v734_v1 }
 0x107   : > { %1213 = vmatmul.msk.bf16.vlgmr.msra.gmra.mxu0 %vm803_vm7, %v768_v2 }
 0x10c   : > { %v681_v3 = vpop.permute.xlu1 %680 }
 0x10d   : > { %v755_v5 = vsel %vm749_vm5, %v1441_v16, %v681_v3 }
 0x10e   : > { %v772_v6 = vsel %vm766_vm6, %v755_v5, %v738_v4 }
 0x10f   : > { %1215 = vmatmul.msk.bf16.vlgmr.msra.gmra.mxu1 %vm803_vm7, %v772_v6  ;;  %v679_v11 = vpop.permute.xlu2 %678 }
 0x110   : > { %v753_v12 = vsel %vm749_vm5, %v1480_v9, %v679_v11 }
 0x116   : > { %v742_v8 = vpop.permute.xlu1 %741 }
 0x117   : > { %v746_v18 = vpop.permute.xlu2 %745 }
 0x118   : > { %v685_v7 = vpop.permute.xlu0 %684 }
 0x119   : > { %v759_v10 = vsel %vm749_vm5, %v1463_v51, %v685_v7 }
 0x11a   : > { %v776_v15 = vsel %vm766_vm6, %v759_v10, %v742_v8 }
 0x11b   : > { %1217 = vmatmul.msk.bf16.vlgmr.msra.gmra.mxu2 %vm803_vm7, %v776_v15 }
 0x125   : > { %v736_v14 = vpop.permute.xlu0 %735 }
 0x126   : > { %v770_v16 = vsel %vm766_vm6, %v753_v12, %v736_v14 }
 0x127   : > { %1214 = vmatmul.msk.bf16.gmra.mxu0 %vm803_vm7, %v770_v16 }
 0x12b   : > { %v687_v24 = vpop.permute.xlu2 %686 }
 0x12c   : > { %v761_v25 = vsel %vm749_vm5, %v1521_v13, %v687_v24 }
 0x12f   : > { %v689_v17 = vpop.permute.xlu1 %688 }
 0x130   : > { %v763_v19 = vsel %vm749_vm5, %v1488_v23, %v689_v17 }
 0x131   : > { %v780_v51 = vsel %vm766_vm6, %v763_v19, %v746_v18 }
 0x132   : > { %1219 = vmatmul.msk.bf16.vlgmr.msra.gmra.mxu3 %vm803_vm7, %v780_v51 }
 0x135   : > { %v748_v28 = vpop.permute.xlu2 %747 }
 0x139   : > { %v740_v21 = vpop.permute.xlu1 %739 }
 0x13b   : > { %v683_v20 = vpop.permute.xlu0 %682 }
 0x13c   : > { %v757_v9 = vsel %vm749_vm5, %v1506_v54, %v683_v20 }
 0x13d   : > { %v774_v22 = vsel %vm766_vm6, %v757_v9, %v740_v21 }
 0x13e   : > { %1216 = vmatmul.msk.bf16.gmra.mxu1 %vm803_vm7, %v774_v22 }
 0x143   : > { %v744_v26 = vpop.permute.xlu0 %743 }
 0x144   : > { %v778_v23 = vsel %vm766_vm6, %v761_v25, %v744_v26 }
 0x145   : > { %1218 = vmatmul.msk.bf16.gmra.mxu2 %vm803_vm7, %v778_v23 }
 0x14f   : > { %v691_v27 = vpop.permute.xlu1 %690 }
 0x150   : > { %v765_v29 = vsel %vm749_vm5, %v1536_v37, %v691_v27 }
 0x151   : > { %v782_v54 = vsel %vm766_vm6, %v765_v29, %v748_v28 }
 0x152   : > { %1220 = vmatmul.msk.bf16.gmra.mxu3 %vm803_vm7, %v782_v54 }
 0x184   : > { %v833_v30 = vpop.f32.mrf.mxu0 }
 0x185   : > { %v926_v42 = vmul.f32 %v833_v30, %v833_v30 }
 0x18c   : > { %v835_v13 = vpop.f32.mrf.mxu0  ;;  %v843_v32 = vpop.f32.mrf.mxu1 }
 0x18d   : > { %v1253_v31 = vpack.c.bf16 %v835_v13, %v833_v30  ;;  %v927_v41 = vmul.f32 %v835_v13, %v835_v13  ;;  %v905_v43 = vadd.f32 %v835_v13, %v833_v30  ;;  %v930_v55 = vmul.f32 %v843_v32, %v843_v32 }
 0x18f   : > { %1254 = vst [vmem:[%s1596_s4] sm:$0xff] %v1253_v31   ;;  %v942_v46 = vadd.f32 %v927_v41, %v926_v42 }
 0x194   : > { %v845_v33 = vpop.f32.mrf.mxu1 }
 0x195   : > { %v1263_v34 = vpack.c.bf16 %v845_v33, %v843_v32  ;;  %v931_v60 = vmul.f32 %v845_v33, %v845_v33 }
 0x197   : > { %1291 = vst [vmem:[%s1596_s4 + $0x10] sm:$0xff] %v1263_v34  }
 0x19e   : > { %v853_v35 = vpop.f32.mrf.mxu2 }
 0x19f   : > { %v934_v7 = vmul.f32 %v853_v35, %v853_v35 }
 0x1a4   : > { %v838_v36 = vpop.f32.mrf.mxu0 }
 0x1a5   : > { %v928_v44 = vmul.f32 %v838_v36, %v838_v36  ;;  %v906_v47 = vadd.f32 %v905_v43, %v838_v36 }
 0x1a6   : > { %v855_v37 = vpop.f32.mrf.mxu2 }
 0x1a7   : > { %v1273_v38 = vpack.c.bf16 %v855_v37, %v853_v35  ;;  %v943_v49 = vadd.f32 %v942_v46, %v928_v44  ;;  %v935_v11 = vmul.f32 %v855_v37, %v855_v37 }
 0x1a9   : > { %1293 = vst [vmem:[%s1596_s4 + $0x20] sm:$0xff] %v1273_v38  }
 0x1ac   : > { %v840_v39 = vpop.f32.mrf.mxu0 }
 0x1ad   : > { %v1258_v40 = vpack.c.bf16 %v840_v39, %v838_v36  ;;  %v929_v48 = vmul.f32 %v840_v39, %v840_v39  ;;  %v907_v50 = vadd.f32 %v906_v47, %v840_v39 }
 0x1af   : > { %1290 = vst [vmem:[%s1596_s4 + $0x8] sm:$0xff] %v1258_v40   ;;  %v944_v52 = vadd.f32 %v943_v49, %v929_v48  ;;  %v908_v56 = vadd.f32 %v907_v50, %v843_v32 }
 0x1b1   : > { %v945_v59 = vadd.f32 %v944_v52, %v930_v55  ;;  %v909_v61 = vadd.f32 %v908_v56, %v845_v33 }
 0x1b3   : > { %v946_v0 = vadd.f32 %v945_v59, %v931_v60 }
 0x1b5   : > { %v863_v45 = vpop.f32.mrf.mxu3 }
 0x1b6   : > { %v938_v9 = vmul.f32 %v863_v45, %v863_v45 }
 0x1bb   : > { %v848_v53 = vpop.f32.mrf.mxu1 }
 0x1bc   : > { %v932_v62 = vmul.f32 %v848_v53, %v848_v53  ;;  %v910_v63 = vadd.f32 %v909_v61, %v848_v53 }
 0x1bd   : > { %v865_v57 = vpop.f32.mrf.mxu3 }
 0x1be   : > { %v1283_v58 = vpack.c.bf16 %v865_v57, %v863_v45  ;;  %v947_v2 = vadd.f32 %v946_v0, %v932_v62  ;;  %v939_v23 = vmul.f32 %v865_v57, %v865_v57 }
 0x1c0   : > { %1295 = vst [vmem:[%s1596_s4 + $0x30] sm:$0xff] %v1283_v58  }
 0x1c3   : > { %v850_v1 = vpop.f32.mrf.mxu1 }
 0x1c4   : > { %v1268_v3 = vpack.c.bf16 %v850_v1, %v848_v53  ;;  %v911_v4 = vadd.f32 %v910_v63, %v850_v1  ;;  %v933_v5 = vmul.f32 %v850_v1, %v850_v1 }
 0x1c6   : > { %1292 = vst [vmem:[%s1596_s4 + $0x18] sm:$0xff] %v1268_v3   ;;  %v948_v6 = vadd.f32 %v947_v2, %v933_v5  ;;  %v912_v8 = vadd.f32 %v911_v4, %v853_v35 }
 0x1c8   : > { %v858_v10 = vpop.f32.mrf.mxu2  ;;  %v949_v15 = vadd.f32 %v948_v6, %v934_v7  ;;  %v913_v12 = vadd.f32 %v912_v8, %v855_v37 }
 0x1c9   : > { %v936_v14 = vmul.f32 %v858_v10, %v858_v10 }
 0x1ca   : > { %v950_v16 = vadd.f32 %v949_v15, %v935_v11  ;;  %v914_v17 = vadd.f32 %v913_v12, %v858_v10 }
 0x1cc   : > { %v951_v19 = vadd.f32 %v950_v16, %v936_v14 }
 0x1d0   : > { %v860_v18 = vpop.f32.mrf.mxu2 }
 0x1d1   : > { %v1278_v51 = vpack.c.bf16 %v860_v18, %v858_v10  ;;  %v915_v20 = vadd.f32 %v914_v17, %v860_v18  ;;  %v937_v21 = vmul.f32 %v860_v18, %v860_v18 }
 0x1d3   : > { %1294 = vst [vmem:[%s1596_s4 + $0x28] sm:$0xff] %v1278_v51   ;;  %v916_v22 = vadd.f32 %v915_v20, %v863_v45  ;;  %v952_v24 = vadd.f32 %v951_v19, %v937_v21 }
 0x1d5   : > { %v868_v25 = vpop.f32.mrf.mxu3  ;;  %v953_v26 = vadd.f32 %v952_v24, %v938_v9  ;;  %v917_v27 = vadd.f32 %v916_v22, %v865_v57 }
 0x1d6   : > { %v940_v54 = vmul.f32 %v868_v25, %v868_v25 }
 0x1d7   : > { %v954_v28 = vadd.f32 %v953_v26, %v939_v23  ;;  %v918_v29 = vadd.f32 %v917_v27, %v868_v25 }
 0x1d9   : > { %v955_v13 = vadd.f32 %v954_v28, %v940_v54 }
 0x1dd   : > { %v870_v30 = vpop.f32.mrf.mxu3 }
 0x1de   : > { %v1288_v31 = vpack.c.bf16 %v870_v30, %v868_v25  ;;  %v919_v32 = vadd.f32 %v918_v29, %v870_v30  ;;  %v941_v33 = vmul.f32 %v870_v30, %v870_v30 }
 0x1e0   : > { %1296 = vst [vmem:[%s1596_s4 + $0x38] sm:$0xff] %v1288_v31   ;;  %v920_v34 = vrot.slane %v919_v32, 4  ;;  %v956_v35 = vadd.f32 %v955_v13, %v941_v33 }
 0x1e2   : > { %v921_v36 = vadd.f32 %v920_v34, %v919_v32  ;;  %v957_v37 = vrot.slane %v956_v35, 4 }
 0x1e4   : > { %v922_v38 = vrot.slane %v921_v36, 2  ;;  %v958_v39 = vadd.f32 %v957_v37, %v956_v35 }
 0x1e6   : > { %v923_v40 = vadd.f32 %v922_v38, %v921_v36  ;;  %v959_v41 = vrot.slane %v958_v39, 2 }
 0x1e8   : > { %v924_v42 = vrot.slane %v923_v40, 1  ;;  %v960_v43 = vadd.f32 %v959_v41, %v958_v39 }
 0x1ea   : > { %v961_v44 = vrot.slane %v960_v43, 1  ;;  %v925_v45 = vadd.f32 %v924_v42, %v923_v40 }
 0x1ec   : > { %v962_v46 = vadd.f32 %v961_v44, %v960_v43 }
 0x1ee   : > { %v964_v47 = vsel %vm963_vm8, %v925_v45, %v962_v46 }
 0x1ef   : > { %965 = vst [vmem:[%s181_s8] sm:$0x3] %v964_v47 }
 0x1f0 PF: > { %s14_s12 = sadd.s32 1, %s1325_s12  }
 0x1f1   : > { %p11_p4 = scmp.ge.s32.totalorder %s14_s12, 6  }
 0x1f3   :  { %13 = sbr.rel (!%p11_p4) target bundleno = 1 (0x1), region = 72 }

</bundles_post_ra>
